<compile_context>
chip_gen: v6e
topology: v6e:2x2x1
jax: 0.10.0
libtpu: 0.0.40
codegen_flags: <defaults>
</compile_context>

<pallas_src>
import jax
import jax.numpy as jnp
from jax import lax
from jax.experimental import pallas as pl
from jax.experimental.pallas import tpu as pltpu

EPS = 1e-5
_MIB = 1024 * 1024


def _prescale_norm_kernel(g_ref, x_ref, o_ref):
    # g_ref : SMEM (1,)                      -- learned scalar g
    # x_ref : VMEM (block_rows, d_padded)
    # o_ref : VMEM (block_rows, d_padded)
    xf = x_ref[...].astype(jnp.float32)
    sq = jnp.sum(xf * xf, axis=-1, keepdims=True)           # (block_rows, 1)
    # 1 / clamp(sqrt(sq), eps)  ==  rsqrt(max(sq, eps^2)); fold g in here so
    # the tile-wide work is a single broadcast multiply.
    scale = lax.rsqrt(jnp.maximum(sq, EPS * EPS)) * g_ref[0]
    o_ref[...] = (xf * scale).astype(o_ref.dtype)


def _vmem_limit_bytes():
    # Half of physical VMEM, clamped to [32 MiB, 64 MiB]:
    #   v5e/v6e (128 MiB physical) -> 64 MiB ; v7x (64 MiB physical) -> 32 MiB
    cap = 128 * _MIB
    try:
        info = pltpu.get_tpu_info()
        cap = int(getattr(info, "vmem_capacity_bytes", cap))
    except Exception:
        pass
    return int(min(64 * _MIB, max(32 * _MIB, cap // 2)))


def _choose_block_rows(rows, d_padded, itemsize, vmem_limit):
    # Minimum sublane count per dtype packing: f32 -> 8, bf16 -> 16, 8-bit -> 32.
    min_rows = {4: 8, 2: 16, 1: 32}.get(itemsize, 8)

    # ~4 MiB of f32 working set per block: amortizes the ~0.35us per-grid-step
    # overhead (>=85% of HBM roofline in measured tiled streaming), for any D.
    br_target = (4 * _MIB) // max(4 * d_padded, 1)

    # VMEM budget per block-row: input + output double-buffered at the input
    # dtype plus one materialized f32 temp; keep inside ~2/3 of the limit.
    bytes_per_row = d_padded * (4 * itemsize + 4)
    br_budget = ((2 * vmem_limit) // 3) // max(bytes_per_row, 1)

    br = max(min_rows, min(br_target, br_budget))
    br = (br // min_rows) * min_rows

    rows_padded = pl.cdiv(rows, min_rows) * min_rows
    br = max(min_rows, min(br, rows_padded))

    # Guarantee enough grid steps to feed both TensorCores on v7x megacore;
    # harmless (a handful of extra ~0.35us steps) on single-TC v5e/v6e.
    while br > min_rows and pl.cdiv(rows, br) < 8:
        br = max(min_rows, ((br // 2) // min_rows) * min_rows)
    return br


def prescale_norm(x, g, *, block_rows=None, donate_x=False):
    """PreScaleNorm forward.  x: [..., D]; g: scalar array of shape (1,)."""
    orig_shape = x.shape
    d = orig_shape[-1]

    # Lane-dense last dim: pad D up to a multiple of 128 with zeros so output
    # stores are full unmasked vst's. Zero columns do not change the norm.
    d_padded = pl.cdiv(d, 128) * 128
    x2 = x.reshape(-1, d)
    if d_padded != d:
        x2 = jnp.pad(x2, ((0, 0), (0, d_padded - d)))
    rows = x2.shape[0]

    itemsize = jnp.dtype(x.dtype).itemsize
    vmem_limit = _vmem_limit_bytes()
    if block_rows is None:
        block_rows = _choose_block_rows(rows, d_padded, itemsize, vmem_limit)

    grid = (pl.cdiv(rows, block_rows),)    # ragged tail tile handled by Pallas

    extra = {}
    if donate_x and d_padded == d:
        # Reuse x2's HBM buffer for the output (same shape/dtype). Only safe
        # when the caller does not read x afterwards.
        extra["input_output_aliases"] = {1: 0}

    out = pl.pallas_call(
        _prescale_norm_kernel,
        out_shape=jax.ShapeDtypeStruct((rows, d_padded), x.dtype),
        grid_spec=pltpu.PrefetchScalarGridSpec(
            num_scalar_prefetch=0,
            grid=grid,
            in_specs=[
                pl.BlockSpec(memory_space=pltpu.MemorySpace.SMEM),        # g
                pl.BlockSpec((block_rows, d_padded), lambda i: (i, 0)),   # x
            ],
            out_specs=pl.BlockSpec((block_rows, d_padded), lambda i: (i, 0)),
        ),
        compiler_params=pltpu.CompilerParams(
            dimension_semantics=("parallel",),
            vmem_limit_bytes=vmem_limit,
        ),
        **extra,
    )(g, x2)

    if d_padded != d:
        out = out[:, :d]
    y = out.reshape(orig_shape)
    # TODO(synk): `fn` is an arbitrary wrapped module in the original code;
    # fuse its kernel here (consuming the normalized tile / per-row scale
    # in-VMEM) instead of round-tripping the normalized tensor through HBM --
    # this op is purely HBM-bound, so that fusion is the only remaining
    # large win.
    return y


def prescale_norm_ref(x, g):
    n = jnp.linalg.norm(x.astype(jnp.float32), axis=-1, keepdims=True)
    n = jnp.maximum(n, EPS)
    return (x.astype(jnp.float32) / n * g[0]).astype(x.dtype)


if __name__ == "__main__":
    key = jax.random.PRNGKey(0)
    # Small, Performer-like shape; D=128 keeps the last dim lane-dense.
    B, S, D = 2, 8, 128
    x = jax.random.normal(key, (B, S, D), dtype=jnp.float32)

    # Parameter init matching nn.Parameter(torch.ones(1)).
    g = jnp.ones((1,), dtype=jnp.float32)

    y = jax.block_until_ready(prescale_norm(x, g))
    y_ref = prescale_norm_ref(x, g)

    assert y.shape == x.shape and y.dtype == x.dtype
    # rsqrt-based scale matches max(sqrt, eps)-then-divide to within a few ulps.
    assert jnp.allclose(y, y_ref, atol=1e-4, rtol=1e-4)

    print("KERNEL_OK")
</pallas_src>

<mosaic_0001>
module attributes {stable_mosaic.version = 11 : i64} {
  func.func @_prescale_norm_kernel(%arg0: i32, %arg1: memref<1xf32, #tpu.memory_space<smem>>, %arg2: memref<8x128xf32, #tpu.memory_space<vmem>>, %arg3: memref<8x128xf32, #tpu.memory_space<vmem>>) attributes {dimension_semantics = [#tpu.dimension_semantics<parallel>], iteration_bounds = array<i64: 2>, scalar_prefetch = 0 : i64, scratch_operands = 0 : i64, tpu.core_type = #tpu.core_type<tc>, window_params = [{transform_indices = @transform_0, window_bounds = array<i64: 1>}, {transform_indices = @transform_1, window_bounds = array<i64: 8, 128>}, {transform_indices = @transform_2, window_bounds = array<i64: 8, 128>}]} {
    %c0 = arith.constant 0 : index
    %c0_0 = arith.constant 0 : index
    %0 = vector.load %arg2[%c0, %c0_0] : memref<8x128xf32, #tpu.memory_space<vmem>>, vector<8x128xf32>
    %1 = arith.mulf %0, %0 : vector<8x128xf32>
    %cst = arith.constant dense<0.000000e+00> : vector<8xf32>
    %2 = vector.multi_reduction <add>, %1, %cst [1] : vector<8x128xf32> to vector<8xf32>
    %3 = vector.shape_cast %2 : vector<8xf32> to vector<8x1xf32>
    %cst_1 = arith.constant 1.000000e-10 : f32
    %4 = vector.broadcast %cst_1 : f32 to vector<8x1xf32>
    %5 = arith.maximumf %3, %4 : vector<8x1xf32>
    %6 = math.rsqrt %5 : vector<8x1xf32>
    %c0_2 = arith.constant 0 : index
    %7 = memref.load %arg1[%c0_2] : memref<1xf32, #tpu.memory_space<smem>>
    %8 = vector.broadcast %7 : f32 to vector<8x1xf32>
    %9 = arith.mulf %6, %8 : vector<8x1xf32>
    %10 = vector.broadcast %9 : vector<8x1xf32> to vector<8x128xf32>
    %11 = arith.mulf %0, %10 : vector<8x128xf32>
    %c0_3 = arith.constant 0 : index
    %c0_4 = arith.constant 0 : index
    %12 = vector.load %arg3[%c0_3, %c0_4] : memref<8x128xf32, #tpu.memory_space<vmem>>, vector<8x128xf32>
    tpu.vector_store %arg3[%c0_3, %c0_4], %11 {strides = array<i32>} : memref<8x128xf32, #tpu.memory_space<vmem>>, vector<8x128xf32>,
    return
  }
  func.func @transform_0(%arg0: i32) -> i32 {
    %c0_i32 = arith.constant 0 : i32
    %c0_i32_0 = arith.constant 0 : i32
    return %c0_i32 : i32
  }
  func.func @transform_1(%arg0: i32) -> (i32, i32) {
    %c0_i32 = arith.constant 0 : i32
    %c0_i32_0 = arith.constant 0 : i32
    return %arg0, %c0_i32 : i32, i32
  }
  func.func @transform_2(%arg0: i32) -> (i32, i32) {
    %c0_i32 = arith.constant 0 : i32
    %c0_i32_0 = arith.constant 0 : i32
    return %arg0, %c0_i32 : i32, i32
  }
}

</mosaic_0001>

<bundles_post_ra>
// kernel: tpu_custom_call.1
= control target key start
LH: loop header
LB: loop body
LE: loop exit
PB: predicated region body
PF: predicated region fallthrough
CT: control target
= control target key end

     0   :  { %s570_s0 = inlined_call_operand.<no memory space> [shape: f32[1], index: 0, kind: input, shape index: {}]   ;;  %s571_s1 = inlined_call_operand.hbm [shape: f32[16,128], index: 1, kind: input, shape index: {}]   ;;  %s572_s2 = inlined_call_operand.hbm [shape: f32[16,128], index: 2, kind: output, shape index: {}]  }
   0x1   :  { %7 = sst [smem:[#allocation2]] %s570_s0 }
   0x2   :  { %8 = vsyncpa [#allocation4], 0 }
   0x3   :  { %10 = vsyncpa [#allocation4 + $0x1], 0 }
   0x4   :  { %11 = vsyncpa [#allocation5], 0 }
   0x5   :  { %13 = vsyncpa [#allocation5 + $0x1], 0  ;;  %s429_s11 = smov 0   ;;  %s431_s12 = smov 0  }
   0x6   :  { %s433_s13 = smov 0   ;;  %s435_s14 = smov 0  }
   0x7 LB: > { %s450_s0 = sadd.s32 4294967295, %s407_s14   ;;  %s255_s15 = sadd.s32 4294967294, %s407_s14   ;;  %s407_s14 = sphi %s435_s14, %s589_s14   ;;  %s403_s13 = sphi %s433_s13, %s588_s13   ;;  %s399_s12 = sphi %s431_s12, %s587_s12   ;;  %s395_s11 = sphi %s429_s11, %s586_s11  }
   0x8   : > { %s454_s16 = sadd.s32 1, %s407_s14   ;;  %s47_s17 = sadd.s32 1, %s403_s13 }
   0x9   : > { %s44_s18 = ssub.s32 %s407_s14, %s454_s16  ;;  %p54_p0 = scmp.ne.s32.totalorder %s403_s13, %s399_s12 }
   0xa   : > { %p45_p1 = scmp.eq.s32.totalorder %s44_s18, 0  ;;  %p55_p2 = scmp.eq.s32.totalorder %s407_s14, 0 }
   0xb   : > { %p60_p3 = scmp.ne.s32.totalorder %s399_s12, %s395_s11  ;;  %p61_p4 = scmp.eq.s32.totalorder %s450_s0, 0 }
   0xc   : > { %s466_s19 = scalar_select %p45_p1, %s403_s13, %s47_s17  }
   0xd   : > { %p468_p5 = por %p55_p2, %p54_p0  ;;  %p472_p6 = por %p61_p4, %p60_p3 }
   0xe   : > { %p84_p7 = scmp.eq.s32.totalorder %s450_s0, 1  ;;  %p90_p8 = scmp.eq.s32.totalorder %s255_s15, 1 }
   0xf   : > { %s576_s21 = scalar_select %p472_p6, 1, 0 }
  0x10   : > { %p279_p10 = scmp.lt.s32.totalorder %s407_s14, 2  ;;  %p479_p11 = por %p84_p7, %p54_p0 }
  0x11   : > { %p483_p12 = por %p90_p8, %p60_p3  ;;  %s113_s24 = sand.u32 1, %s403_s13  }
  0x12   : > { %s577_s22 = scalar_select %p479_p11, 1, 0 }
  0x13   : > { %s578_s23 = scalar_select %p483_p12, 1, 0 }
  0x14   : > { %s259_s25 = sshll.u32 %s407_s14, 7  ;;  %s258_s26 = sshll.u32 %s113_s24, 3 }
  0x15   : > { %s492_s29 = scalar_lea.hbm %s571_s1, %s259_s25  ;;  %s117_s30 = scalar_lea.vmem [#allocation3], %s258_s26 }
  0x16   : > { %s124_s3 = sshll.u32 %s117_s30, 4  ;;  %p496_p13 = pnand %p279_p10, %p468_p5  ;;  %s500_s3 = int_to_ptr.vmem [resolvable:$true] %s124_s3 }
  0x17   : > { %s114_s5 = scalar_lea.sflag [#allocation4], %s113_s24  ;;  %s315_s6 = scalar_lea.hbm %s492_s29, 128 }
  0x18   : > { %p316_p2 = scmp.ne.s32.totalorder %s492_s29, %s315_s6  ;;  %p317_p3 = pneg %p496_p13 }
  0x19   : > { %s320_s9 = scalar_lea.hbm %s571_s1, 256  ;;  %p321_p5 = scmp.lt.s32.totalorder %s492_s29, %s571_s1 }
  0x1a   : > { %p318_p4 = pnand %p317_p3, %p316_p2  ;;  %p322_p8 = scmp.lt.s32.totalorder %s320_s9, %s315_s6 }
  0x1c   : > { %p319_p7 = pneg %p318_p4  ;;  %p323_p10 = por %p322_p8, %p321_p5 }
  0x1e   : > { %p324_p9 = pnand %p323_p10, %p319_p7 }
  0x20   : > { %327 = shalt.err (!%p324_p9)
}
  0x21   : > { %s328_s17 = scalar_lea.vmem %s500_s3, 128  ;;  %s409_s18 = smov [#allocation3]  }
  0x22   : > { %p329_p0 = scmp.ne.s32.totalorder %s500_s3, %s328_s17  ;;  %s333_s20 = sshll.u32 %s409_s18, 4  ;;  %s334_s20 = int_to_ptr.vmem [resolvable:$false] %s333_s20 }
  0x23   : > { %s335_s24 = scalar_lea.vmem %s334_s20, 256  ;;  %p336_p4 = scmp.lt.s32.totalorder %s500_s3, %s334_s20 }
  0x24   : > { %p331_p1 = pnand %p329_p0, %p317_p3  ;;  %p337_p12 = scmp.lt.s32.totalorder %s335_s24, %s328_s17 }
  0x26   : > { %p332_p2 = pneg %p331_p1  ;;  %p338_p11 = por %p337_p12, %p336_p4 }
  0x28   : > { %p339_p6 = pnand %p338_p11, %p332_p2 }
  0x2a   : > { %342 = shalt.err (!%p339_p6)
}
  0x2b   : > { %274 = dma.hbm_to_vmem [thread:$0]  (!%p496_p13), %s492_s29, 128, %s500_s3, %s114_s5  }
  0x2c   : > { %p580_p9 = scmp.lt.s32.totalorder %s407_s14, 3  ;;  %p581_p7 = scmp.ge.s32.totalorder %s407_s14, 1 }
  0x2e   : > { %p130_p0 = pnand %p581_p7, %p580_p9 }
  0x2f   : > { %s527_s25 = sand.u32 (!%p130_p0), 1, %s399_s12   ;;  %p582_p6 = scmp.ne.s32.totalorder (!%p130_p0), %s576_s21, 0 }
  0x30   : > { %133 = sbr.rel (%p130_p0) target bundleno = 228 (0xe4), region = 28  ;;  %s261_s26 = sshll.u32 (!%p130_p0), %s527_s25, 3 }
  0x31   : > { %s136_s27 = scalar_lea.sflag (!%p130_p0), [#allocation4], %s527_s25  ;;  %s139_s28 = scalar_lea.vmem (!%p130_p0), [#allocation3], %s261_s26 }
  0x35   : > { %386 = dma.done.wait (%p582_p6), %s136_s27, 128  }
  0x36   : > { %388 = vsyncadd (%p582_p6), %s136_s27, 4294967168  ;;  %v160_v0 = vld [vmem:[%s139_s28] sm:$0xff]  ;;  %s166_s29 = sld [smem:[#allocation2]]  ;;  %s264_s30 = sshll.u32 %s450_s0, 7 }
  0x37   : > { %v161_v1 = vmul.f32 %v160_v0, %v160_v0  ;;  %s159_s3 = scalar_lea.vmem [#allocation6], %s261_s26  ;;  %s183_s6 = scalar_lea.hbm %s572_s2, %s264_s30 }
  0x38   : > { %s185_s4 = sshll.u32 %s159_s3, 4  ;;  %s172_s7 = scalar_lea.sflag [#allocation5], %s527_s25  ;;  %s186_s4 = int_to_ptr.vmem [resolvable:$true] %s185_s4 }
  0x39   : > { %162 = vadd.xlane.f32.xlu0 %v161_v1  ;;  %s343_s8 = scalar_lea.vmem %s186_s4, 128  ;;  %p583_p12 = scmp.ne.s32.totalorder %s577_s22, 0 }
  0x3a   : > { %p344_p11 = scmp.ne.s32.totalorder %s186_s4, %s343_s8  ;;  %s410_s9 = smov [#allocation6]  }
  0x3b   : > { %s347_s10 = sshll.u32 %s410_s9, 4  ;;  %s348_s10 = int_to_ptr.vmem [resolvable:$false] %s347_s10 }
  0x3c   : > { %v167_v4 = vstv %s166_s29  ;;  %p345_p13 = pnand %p344_p11, %p583_p12  ;;  %s349_s0 = scalar_lea.vmem %s348_s10, 256 }
  0x3d   : > { %p350_p3 = scmp.lt.s32.totalorder %s186_s4, %s348_s10  ;;  %p351_p5 = scmp.lt.s32.totalorder %s349_s0, %s343_s8 }
  0x3e   : > { %p346_p1 = pneg %p345_p13 }
  0x3f   : > { %p352_p8 = por %p351_p5, %p350_p3 }
  0x41   : > { %p353_p10 = pnand %p352_p8, %p346_p1 }
  0xc2   : > { %v163_v2 = vpop.xlane.xlu0 %162 }
  0xc3   : > { %v164_v3 = vmax.f32 %v163_v2, 1e-10 }
  0xc5   : > { %313 = vrsqrt.f32 %v164_v3 }
  0xd2   : > { %v314_v5 = vpop.eup %313 }
  0xd3   : > { %v168_v6 = vmul.f32 %v314_v5, %v167_v4 }
  0xd5   : > { %v169_v7 = vmul.f32 %v168_v6, %v160_v0 }
  0xd7   : > { %170 = vst [vmem:[%s159_s3] sm:$0xff] %v169_v7 }
  0xd8   : > { %356 = shalt.err (!%p353_p10)
}
  0xd9   : > { %s357_s15 = scalar_lea.hbm %s183_s6, 128  ;;  %s361_s20 = scalar_lea.hbm %s572_s2, 256 }
  0xda   : > { %p358_p2 = scmp.ne.s32.totalorder %s183_s6, %s357_s15  ;;  %p362_p7 = scmp.lt.s32.totalorder %s183_s6, %s572_s2 }
  0xdb   : > { %p363_p0 = scmp.lt.s32.totalorder %s361_s20, %s357_s15 }
  0xdc   : > { %p359_p4 = pnand %p358_p2, %p583_p12 }
  0xdd   : > { %p364_p6 = por %p363_p0, %p362_p7 }
  0xde   : > { %p360_p9 = pneg %p359_p4 }
  0xe0   : > { %p365_p11 = pnand %p364_p6, %p360_p9 }
  0xe2   : > { %368 = shalt.err (!%p365_p11)
}
  0xe3   : > { %269 = dma.vmem_to_hbm [thread:$0]  (%p583_p12), %s186_s4, 128, %s183_s6, %s172_s7  }
  0xe4 PF: > { %s197_s26 = sand.u32 1, %s395_s11   ;;  %p584_p13 = scmp.ne.s32.totalorder %s578_s23, 0 }
  0xe5   : > { %p585_p1 = scmp.ge.s32.totalorder %s407_s14, 2  ;;  %s198_s27 = scalar_lea.sflag [#allocation5], %s197_s26 }
  0xe7   : > { %p276_p3 = pnand %p585_p1, %p584_p13 }
  0xe9   : > { %p277_p5 = pneg %p276_p3 }
  0xeb   : > { %390 = dma.done.wait (%p277_p5), %s198_s27, 128  }
  0xec   : > { %392 = vsyncadd (%p277_p5), %s198_s27, 4294967168  ;;  %p16_p8 = scmp.ge.s32.totalorder %s454_s16, 4   ;;  %s586_s11 = smov %s399_s12 }
  0xed   : > { %s587_s12 = smov %s403_s13  ;;  %s588_s13 = smov %s466_s19 }
  0xee   : > { %s589_s14 = smov %s454_s16  ;;  %18 = sbr.rel (!%p16_p8) target bundleno = 7 (0x7), region = 73 }
  0xf3   :  { %203 = vsyncpa [#allocation4], 1 }
  0xf4   :  { %205 = vsyncpa [#allocation4 + $0x1], 1 }
  0xf5   :  { %206 = vsyncpa [#allocation5], 1 }
  0xf6   :  { %208 = vsyncpa [#allocation5 + $0x1], 1 }

</bundles_post_ra>
